<compile_context>
chip_gen: v7x
topology: tpu7x:2x2x1
jax: 0.10.0
libtpu: 0.0.40
codegen_flags: <defaults>
</compile_context>

<pallas_src>
import math
from functools import partial

import jax
import jax.numpy as jnp
from jax import lax
from jax.experimental import pallas as pl
from jax.experimental.pallas import tpu as pltpu


_SQRT_2_OVER_PI = math.sqrt(2.0 / math.pi)
_INV_SQRT_2 = 1.0 / math.sqrt(2.0)


def _round_up(x, m):
    return ((x + m - 1) // m) * m


def _physical_vmem_bytes():
    try:
        return int(pltpu.get_tpu_info().vmem_capacity_bytes)
    except Exception:
        return 64 * 1024 * 1024  # conservative: v7x per-TensorCore VMEM


def _cmlp_kernel(x_ref, w1_ref, b1_ref, w2_ref, b2_ref, o_ref, acc_ref,
                 *, mxu_dtype, approximate_gelu):
    # x_ref:   (1, C_in, tm)    pixels on lanes, channels on sublanes
    # w1_ref:  (tc_hid, C_in)   fc1 weight chunk (PyTorch [out, in] layout)
    # b1_ref:  (tc_hid, 1)
    # w2_ref:  (C_out, tc_hid)  fc2 weight chunk
    # b2_ref:  (C_out, 1)
    # o_ref:   (1, C_out, tm)
    # acc_ref: (C_out, tm) f32  fc2 partial accumulator across hidden chunks
    k = pl.program_id(2)

    @pl.when(k == 0)
    def _():
        acc_ref[...] = jnp.zeros_like(acc_ref)

    x = x_ref[0, :, :]
    w1 = w1_ref[...]
    w2 = w2_ref[...]
    if mxu_dtype is not None:
        # Feed the MXU in bf16 (or other narrow dtype); accumulation stays f32.
        x = x.astype(mxu_dtype)
        w1 = w1.astype(mxu_dtype)
        w2 = w2.astype(mxu_dtype)

    # fc1 chunk: (tc_hid, C_in) @ (C_in, tm) -> (tc_hid, tm), f32 accumulation.
    h = jnp.dot(w1, x, preferred_element_type=jnp.float32)
    h = h + b1_ref[...].astype(jnp.float32)  # broadcast over the lane axis

    # GELU in f32.
    if approximate_gelu:
        # tanh approximation -> EUP slot (frees the VPU erf polynomial).
        h = 0.5 * h * (1.0 + jnp.tanh(_SQRT_2_OVER_PI * (h + 0.044715 * h * h * h)))
    else:
        # Exact erf GELU (matches torch.nn.GELU default).
        h = 0.5 * h * (1.0 + lax.erf(h * _INV_SQRT_2))

    # fc2 chunk: accumulate partial products over hidden chunks in f32.
    a = h.astype(w2.dtype)
    acc_ref[...] += jnp.dot(w2, a, preferred_element_type=jnp.float32)

    @pl.when(k == pl.num_programs(2) - 1)
    def _():
        y = acc_ref[...] + b2_ref[...].astype(jnp.float32)
        o_ref[0, :, :] = y.astype(o_ref.dtype)


def cmlp_pallas(x_nchw, w1, b1, w2, b2, *, tm=1024, hid_chunk=512,
                mxu_dtype=None, approximate_gelu=False):
    """CMlp forward (fc1 1x1 conv -> GELU -> fc2 1x1 conv).

    x_nchw: [B, C_in, H, W]
    w1:     [C_hid, C_in]   (PyTorch fc1.weight squeezed)
    b1:     [C_hid]
    w2:     [C_out, C_hid]  (PyTorch fc2.weight squeezed)
    b2:     [C_out]
    returns [B, C_out, H, W]
    """
    B, C_in, H, W = x_nchw.shape
    C_hid = w1.shape[0]
    C_out = w2.shape[0]
    HW = H * W

    # Pure reshapes — no transposes through HBM, no pad/slice copies.
    x = x_nchw.reshape(B, C_in, HW)
    b1_2d = b1.reshape(C_hid, 1)
    b2_2d = b2.reshape(C_out, 1)

    # ---- spatial tile: lane-dense multiple of 128, ragged last block ----
    tm_cap = max(128, (tm // 128) * 128)
    tm_eff = min(tm_cap, _round_up(HW, 128))
    n_hw = pl.cdiv(HW, tm_eff)
    # v7x megacore balance: keep >= 2 parallel grid steps when data allows.
    while B * n_hw < 2 and tm_eff > 128:
        tm_eff = max(128, _round_up(tm_eff // 2, 128))
        n_hw = pl.cdiv(HW, tm_eff)

    # ---- hidden-dim streaming ----
    if C_hid <= hid_chunk:
        tc_hid = C_hid
    else:
        tc_hid = 0
        cap = max(128, (hid_chunk // 128) * 128)
        for cand in range(cap, 0, -128):
            if C_hid % cand == 0:
                tc_hid = cand
                break
        if tc_hid == 0:
            # TODO(synk): mask ragged hidden chunks; for now keep C_hid resident.
            tc_hid = C_hid
    n_hid = C_hid // tc_hid
    weights_stream = n_hid > 1

    grid = (B, n_hw, n_hid)

    # ---- VMEM budget (blocks x buffer counts + accumulator + slack) ----
    act_isize = jnp.dtype(x_nchw.dtype).itemsize
    w_isize = jnp.dtype(w1.dtype).itemsize
    x_blk = C_in * tm_eff * act_isize
    o_blk = C_out * tm_eff * act_isize
    w_blk = (tc_hid * C_in + C_out * tc_hid + tc_hid + C_out) * w_isize
    acc_blk = C_out * tm_eff * 4
    wbuf = 2 if weights_stream else 1
    needed = 2 * (x_blk + o_blk) + wbuf * w_blk + acc_blk
    phys = _physical_vmem_bytes()
    vmem_limit = int(min(max(2 * needed + (8 << 20), 32 << 20), phys - (2 << 20)))

    cost = pl.CostEstimate(
        flops=2 * B * HW * (C_in * C_hid + C_hid * C_out),
        transcendentals=B * HW * C_hid,
        bytes_accessed=B * HW * (C_in + C_out) * act_isize
        + (C_hid * C_in + C_out * C_hid + C_hid + C_out) * w_isize,
    )

    kernel = partial(_cmlp_kernel, mxu_dtype=mxu_dtype,
                     approximate_gelu=approximate_gelu)

    def _specs(use_pipeline_mode):
        def wspec(shape, index_map, constant):
            if use_pipeline_mode and constant:
                # Constant block index -> double-buffering is pure VMEM waste.
                return pl.BlockSpec(shape, index_map,
                                    pipeline_mode=pl.Buffered(1))
            return pl.BlockSpec(shape, index_map)

        in_specs = [
            pl.BlockSpec((1, C_in, tm_eff), lambda b, j, k: (b, 0, j)),
            wspec((tc_hid, C_in), lambda b, j, k: (k, 0), not weights_stream),
            wspec((tc_hid, 1), lambda b, j, k: (k, 0), not weights_stream),
            wspec((C_out, tc_hid), lambda b, j, k: (0, k), not weights_stream),
            wspec((C_out, 1), lambda b, j, k: (0, 0), True),
        ]
        out_specs = pl.BlockSpec((1, C_out, tm_eff), lambda b, j, k: (b, 0, j))
        return in_specs, out_specs

    def _build(use_pipeline_mode):
        in_specs, out_specs = _specs(use_pipeline_mode)
        return pl.pallas_call(
            kernel,
            out_shape=jax.ShapeDtypeStruct((B, C_out, HW), x_nchw.dtype),
            grid_spec=pltpu.PrefetchScalarGridSpec(
                num_scalar_prefetch=0,
                grid=grid,
                in_specs=in_specs,
                out_specs=out_specs,
                scratch_shapes=[pltpu.VMEM((C_out, tm_eff), jnp.float32)],
            ),
            compiler_params=pltpu.CompilerParams(
                dimension_semantics=("parallel", "parallel", "arbitrary"),
                vmem_limit_bytes=vmem_limit,
            ),
            cost_estimate=cost,
        )

    try:
        out = _build(True)(x, w1, b1_2d, w2, b2_2d)
    except Exception:
        # Fallback if this JAX build rejects pipeline_mode on pallas_call specs.
        out = _build(False)(x, w1, b1_2d, w2, b2_2d)

    # Pure reshape back to NCHW — no transpose, no slice.
    return out.reshape(B, C_out, H, W)


def _reference(x_nchw, w1, b1, w2, b2):
    # Pure-JAX reference of the same math (1x1 convs over channels, f32).
    x = x_nchw.astype(jnp.float32)
    h = jnp.einsum("oc,bchw->bohw", w1.astype(jnp.float32), x)
    h = h + b1.astype(jnp.float32)[None, :, None, None]
    h = 0.5 * h * (1.0 + lax.erf(h / jnp.sqrt(2.0)))
    y = jnp.einsum("oc,bchw->bohw", w2.astype(jnp.float32), h)
    y = y + b2.astype(jnp.float32)[None, :, None, None]
    return y.astype(x_nchw.dtype)


if __name__ == "__main__":
    # CMlp(in_features=4, hidden_features=32, out_features=4)
    B, C_in, H, W = 2, 4, 16, 16
    C_hid, C_out = 32, 4

    key = jax.random.PRNGKey(0)
    kx, k1, kb1, k2, kb2 = jax.random.split(key, 5)

    x = jax.random.normal(kx, (B, C_in, H, W), dtype=jnp.float32)

    # Deterministic synthetic parameters in PyTorch [out, in] layout
    # (Conv2d 1x1 weight [C_out, C_in, 1, 1] squeezed).
    fan1 = 1.0 / math.sqrt(C_in)
    w1 = jax.random.uniform(k1, (C_hid, C_in), jnp.float32, -fan1, fan1)
    b1 = jax.random.uniform(kb1, (C_hid,), jnp.float32, -fan1, fan1)
    fan2 = 1.0 / math.sqrt(C_hid)
    w2 = jax.random.uniform(k2, (C_out, C_hid), jnp.float32, -fan2, fan2)
    b2 = jax.random.uniform(kb2, (C_out,), jnp.float32, -fan2, fan2)

    ref = _reference(x, w1, b1, w2, b2)

    # Exact path (native-dtype MXU feed, erf GELU) — matches the torch module.
    out = jax.block_until_ready(cmlp_pallas(x, w1, b1, w2, b2))
    assert out.shape == (B, C_out, H, W)
    assert jnp.allclose(out, ref, atol=1e-5, rtol=1e-5)

    # Throughput path (bf16 MXU feed, f32 accumulation) — looser tolerance.
    out_bf16 = jax.block_until_ready(
        cmlp_pallas(x, w1, b1, w2, b2, mxu_dtype=jnp.bfloat16))
    assert jnp.allclose(out_bf16, ref, atol=5e-2, rtol=5e-2)

    print("KERNEL_OK")
</pallas_src>

<mosaic_0001>
module attributes {stable_mosaic.version = 11 : i64} {
  func.func @_cmlp_kernel(%arg0: i32, %arg1: i32, %arg2: i32, %arg3: memref<1x4x256xf32, #tpu.memory_space<vmem>>, %arg4: memref<32x4xf32, #tpu.memory_space<vmem>>, %arg5: memref<32x1xf32, #tpu.memory_space<vmem>>, %arg6: memref<4x32xf32, #tpu.memory_space<vmem>>, %arg7: memref<4x1xf32, #tpu.memory_space<vmem>>, %arg8: memref<1x4x256xf32, #tpu.memory_space<vmem>>, %arg9: memref<4x256xf32, #tpu.memory_space<vmem>>) attributes {dimension_semantics = [#tpu.dimension_semantics<parallel>, #tpu.dimension_semantics<parallel>, #tpu.dimension_semantics<arbitrary>], iteration_bounds = array<i64: 2, 1, 1>, scalar_prefetch = 0 : i64, scratch_operands = 1 : i64, tpu.core_type = #tpu.core_type<tc>, window_params = [{transform_indices = @transform_0, window_bounds = array<i64: 1, 4, 256>}, {pipeline_mode = #tpu.pipeline_mode<synchronous>, transform_indices = @transform_1, window_bounds = array<i64: 32, 4>}, {pipeline_mode = #tpu.pipeline_mode<synchronous>, transform_indices = @transform_2, window_bounds = array<i64: 32, 1>}, {pipeline_mode = #tpu.pipeline_mode<synchronous>, transform_indices = @transform_3, window_bounds = array<i64: 4, 32>}, {pipeline_mode = #tpu.pipeline_mode<synchronous>, transform_indices = @transform_4, window_bounds = array<i64: 4, 1>}, {transform_indices = @transform_5, window_bounds = array<i64: 1, 4, 256>}]} {
    %c0_i32 = arith.constant 0 : i32
    %0 = arith.cmpi eq, %arg2, %c0_i32 : i32
    %1 = arith.extui %0 : i1 to i32
    %c0_i32_0 = arith.constant 0 : i32
    %2 = arith.cmpi ne, %1, %c0_i32_0 : i32
    scf.if %2 {
      %cst_19 = arith.constant 0.000000e+00 : f32
      %26 = vector.broadcast %cst_19 : f32 to vector<4x256xf32>
      %c0_20 = arith.constant 0 : index
      %c0_21 = arith.constant 0 : index
      %27 = vector.load %arg9[%c0_20, %c0_21] : memref<4x256xf32, #tpu.memory_space<vmem>>, vector<4x256xf32>
      tpu.vector_store %arg9[%c0_20, %c0_21], %26 {strides = array<i32>} : memref<4x256xf32, #tpu.memory_space<vmem>>, vector<4x256xf32>,
    } else {
    }
    %c0 = arith.constant 0 : index
    %c0_1 = arith.constant 0 : index
    %c0_2 = arith.constant 0 : index
    %3 = vector.load %arg3[%c0, %c0_1, %c0_2] : memref<1x4x256xf32, #tpu.memory_space<vmem>>, vector<1x4x256xf32>
    %4 = vector.shape_cast %3 : vector<1x4x256xf32> to vector<4x256xf32>
    %c0_3 = arith.constant 0 : index
    %c0_4 = arith.constant 0 : index
    %5 = vector.load %arg4[%c0_3, %c0_4] : memref<32x4xf32, #tpu.memory_space<vmem>>, vector<32x4xf32>
    %c0_5 = arith.constant 0 : index
    %c0_6 = arith.constant 0 : index
    %6 = vector.load %arg6[%c0_5, %c0_6] : memref<4x32xf32, #tpu.memory_space<vmem>>, vector<4x32xf32>
    %cst = arith.constant dense<0.000000e+00> : vector<32x256xf32>
    %7 = tpu.matmul %5, %4, %cst {dimension_numbers = #tpu.dot_dimension_numbers<[1], [0], [0], [1], [0, 0, 1, 1], [], []>} : vector<32x4xf32>, vector<4x256xf32>, vector<32x256xf32> -> vector<32x256xf32>
    %c0_7 = arith.constant 0 : index
    %c0_8 = arith.constant 0 : index
    %8 = vector.load %arg5[%c0_7, %c0_8] : memref<32x1xf32, #tpu.memory_space<vmem>>, vector<32x1xf32>
    %9 = vector.broadcast %8 : vector<32x1xf32> to vector<32x256xf32>
    %10 = arith.addf %7, %9 : vector<32x256xf32>
    %cst_9 = arith.constant 5.000000e-01 : f32
    %11 = vector.broadcast %cst_9 : f32 to vector<32x256xf32>
    %12 = arith.mulf %11, %10 : vector<32x256xf32>
    %cst_10 = arith.constant 0.707106769 : f32
    %13 = vector.broadcast %cst_10 : f32 to vector<32x256xf32>
    %14 = arith.mulf %10, %13 : vector<32x256xf32>
    %15 = math.erf %14 : vector<32x256xf32>
    %cst_11 = arith.constant 1.000000e+00 : f32
    %16 = vector.broadcast %cst_11 : f32 to vector<32x256xf32>
    %17 = arith.addf %16, %15 : vector<32x256xf32>
    %18 = arith.mulf %12, %17 : vector<32x256xf32>
    %c0_12 = arith.constant 0 : index
    %c0_13 = arith.constant 0 : index
    %19 = vector.load %arg9[%c0_12, %c0_13] : memref<4x256xf32, #tpu.memory_space<vmem>>, vector<4x256xf32>
    %cst_14 = arith.constant dense<0.000000e+00> : vector<4x256xf32>
    %20 = tpu.matmul %6, %18, %cst_14 {dimension_numbers = #tpu.dot_dimension_numbers<[1], [0], [0], [1], [0, 0, 1, 1], [], []>} : vector<4x32xf32>, vector<32x256xf32>, vector<4x256xf32> -> vector<4x256xf32>
    %21 = arith.addf %19, %20 : vector<4x256xf32>
    %c0_15 = arith.constant 0 : index
    %c0_16 = arith.constant 0 : index
    %22 = vector.load %arg9[%c0_15, %c0_16] : memref<4x256xf32, #tpu.memory_space<vmem>>, vector<4x256xf32>
    tpu.vector_store %arg9[%c0_15, %c0_16], %21 {strides = array<i32>} : memref<4x256xf32, #tpu.memory_space<vmem>>, vector<4x256xf32>,
    %c0_i32_17 = arith.constant 0 : i32
    %23 = arith.cmpi eq, %arg2, %c0_i32_17 : i32
    %24 = arith.extui %23 : i1 to i32
    %c0_i32_18 = arith.constant 0 : i32
    %25 = arith.cmpi ne, %24, %c0_i32_18 : i32
    scf.if %25 {
      %c0_19 = arith.constant 0 : index
      %c0_20 = arith.constant 0 : index
      %26 = vector.load %arg9[%c0_19, %c0_20] : memref<4x256xf32, #tpu.memory_space<vmem>>, vector<4x256xf32>
      %c0_21 = arith.constant 0 : index
      %c0_22 = arith.constant 0 : index
      %27 = vector.load %arg7[%c0_21, %c0_22] : memref<4x1xf32, #tpu.memory_space<vmem>>, vector<4x1xf32>
      %28 = vector.broadcast %27 : vector<4x1xf32> to vector<4x256xf32>
      %29 = arith.addf %26, %28 : vector<4x256xf32>
      %c0_23 = arith.constant 0 : index
      %c0_24 = arith.constant 0 : index
      %c0_25 = arith.constant 0 : index
      %30 = vector.load %arg8[%c0_23, %c0_24, %c0_25] : memref<1x4x256xf32, #tpu.memory_space<vmem>>, vector<1x4x256xf32>
      %31 = vector.shape_cast %30 : vector<1x4x256xf32> to vector<4x256xf32>
      %32 = vector.shape_cast %29 : vector<4x256xf32> to vector<1x4x256xf32>
      tpu.vector_store %arg8[%c0_23, %c0_24, %c0_25], %32 {strides = array<i32>} : memref<1x4x256xf32, #tpu.memory_space<vmem>>, vector<1x4x256xf32>,
    } else {
    }
    return
  }
  func.func @transform_0(%arg0: i32, %arg1: i32, %arg2: i32) -> (i32, i32, i32) {
    %c0_i32 = arith.constant 0 : i32
    %c0_i32_0 = arith.constant 0 : i32
    return %arg0, %c0_i32, %arg1 : i32, i32, i32
  }
  func.func @transform_1(%arg0: i32, %arg1: i32, %arg2: i32) -> (i32, i32) {
    %c0_i32 = arith.constant 0 : i32
    %c0_i32_0 = arith.constant 0 : i32
    return %arg2, %c0_i32 : i32, i32
  }
  func.func @transform_2(%arg0: i32, %arg1: i32, %arg2: i32) -> (i32, i32) {
    %c0_i32 = arith.constant 0 : i32
    %c0_i32_0 = arith.constant 0 : i32
    return %arg2, %c0_i32 : i32, i32
  }
  func.func @transform_3(%arg0: i32, %arg1: i32, %arg2: i32) -> (i32, i32) {
    %c0_i32 = arith.constant 0 : i32
    %c0_i32_0 = arith.constant 0 : i32
    return %c0_i32, %arg2 : i32, i32
  }
  func.func @transform_4(%arg0: i32, %arg1: i32, %arg2: i32) -> (i32, i32) {
    %c0_i32 = arith.constant 0 : i32
    %c0_i32_0 = arith.constant 0 : i32
    %c0_i32_1 = arith.constant 0 : i32
    return %c0_i32, %c0_i32_0 : i32, i32
  }
  func.func @transform_5(%arg0: i32, %arg1: i32, %arg2: i32) -> (i32, i32, i32) {
    %c0_i32 = arith.constant 0 : i32
    %c0_i32_0 = arith.constant 0 : i32
    return %arg0, %c0_i32, %arg1 : i32, i32, i32
  }
}

module attributes {stable_mosaic.version = 11 : i64} {
  func.func @_cmlp_kernel(%arg0: i32, %arg1: i32, %arg2: i32, %arg3: memref<1x4x256xf32, #tpu.memory_space<vmem>>, %arg4: memref<32x4xf32, #tpu.memory_space<vmem>>, %arg5: memref<32x1xf32, #tpu.memory_space<vmem>>, %arg6: memref<4x32xf32, #tpu.memory_space<vmem>>, %arg7: memref<4x1xf32, #tpu.memory_space<vmem>>, %arg8: memref<1x4x256xf32, #tpu.memory_space<vmem>>, %arg9: memref<4x256xf32, #tpu.memory_space<vmem>>) attributes {dimension_semantics = [#tpu.dimension_semantics<parallel>, #tpu.dimension_semantics<parallel>, #tpu.dimension_semantics<arbitrary>], iteration_bounds = array<i64: 2, 1, 1>, scalar_prefetch = 0 : i64, scratch_operands = 1 : i64, tpu.core_type = #tpu.core_type<tc>, window_params = [{transform_indices = @transform_0, window_bounds = array<i64: 1, 4, 256>}, {transform_indices = @transform_1, window_bounds = array<i64: 32, 4>}, {transform_indices = @transform_2, window_bounds = array<i64: 32, 1>}, {transform_indices = @transform_3, window_bounds = array<i64: 4, 32>}, {pipeline_mode = #tpu.pipeline_mode<synchronous>, transform_indices = @transform_4, window_bounds = array<i64: 4, 1>}, {transform_indices = @transform_5, window_bounds = array<i64: 1, 4, 256>}]} {
    %c0_i32 = arith.constant 0 : i32
    %0 = arith.cmpi eq, %arg2, %c0_i32 : i32
    %1 = arith.extui %0 : i1 to i32
    %c0_i32_0 = arith.constant 0 : i32
    %2 = arith.cmpi ne, %1, %c0_i32_0 : i32
    scf.if %2 {
      %cst_19 = arith.constant 0.000000e+00 : f32
      %26 = vector.broadcast %cst_19 : f32 to vector<4x256xf32>
      %c0_20 = arith.constant 0 : index
      %c0_21 = arith.constant 0 : index
      %27 = vector.load %arg9[%c0_20, %c0_21] : memref<4x256xf32, #tpu.memory_space<vmem>>, vector<4x256xf32>
      tpu.vector_store %arg9[%c0_20, %c0_21], %26 {strides = array<i32>} : memref<4x256xf32, #tpu.memory_space<vmem>>, vector<4x256xf32>,
    } else {
    }
    %c0 = arith.constant 0 : index
    %c0_1 = arith.constant 0 : index
    %c0_2 = arith.constant 0 : index
    %3 = vector.load %arg3[%c0, %c0_1, %c0_2] : memref<1x4x256xf32, #tpu.memory_space<vmem>>, vector<1x4x256xf32>
    %4 = vector.shape_cast %3 : vector<1x4x256xf32> to vector<4x256xf32>
    %c0_3 = arith.constant 0 : index
    %c0_4 = arith.constant 0 : index
    %5 = vector.load %arg4[%c0_3, %c0_4] : memref<32x4xf32, #tpu.memory_space<vmem>>, vector<32x4xf32>
    %c0_5 = arith.constant 0 : index
    %c0_6 = arith.constant 0 : index
    %6 = vector.load %arg6[%c0_5, %c0_6] : memref<4x32xf32, #tpu.memory_space<vmem>>, vector<4x32xf32>
    %cst = arith.constant dense<0.000000e+00> : vector<32x256xf32>
    %7 = tpu.matmul %5, %4, %cst {dimension_numbers = #tpu.dot_dimension_numbers<[1], [0], [0], [1], [0, 0, 1, 1], [], []>} : vector<32x4xf32>, vector<4x256xf32>, vector<32x256xf32> -> vector<32x256xf32>
    %c0_7 = arith.constant 0 : index
    %c0_8 = arith.constant 0 : index
    %8 = vector.load %arg5[%c0_7, %c0_8] : memref<32x1xf32, #tpu.memory_space<vmem>>, vector<32x1xf32>
    %9 = vector.broadcast %8 : vector<32x1xf32> to vector<32x256xf32>
    %10 = arith.addf %7, %9 : vector<32x256xf32>
    %cst_9 = arith.constant 5.000000e-01 : f32
    %11 = vector.broadcast %cst_9 : f32 to vector<32x256xf32>
    %12 = arith.mulf %11, %10 : vector<32x256xf32>
    %cst_10 = arith.constant 0.707106769 : f32
    %13 = vector.broadcast %cst_10 : f32 to vector<32x256xf32>
    %14 = arith.mulf %10, %13 : vector<32x256xf32>
    %15 = math.erf %14 : vector<32x256xf32>
    %cst_11 = arith.constant 1.000000e+00 : f32
    %16 = vector.broadcast %cst_11 : f32 to vector<32x256xf32>
    %17 = arith.addf %16, %15 : vector<32x256xf32>
    %18 = arith.mulf %12, %17 : vector<32x256xf32>
    %c0_12 = arith.constant 0 : index
    %c0_13 = arith.constant 0 : index
    %19 = vector.load %arg9[%c0_12, %c0_13] : memref<4x256xf32, #tpu.memory_space<vmem>>, vector<4x256xf32>
    %cst_14 = arith.constant dense<0.000000e+00> : vector<4x256xf32>
    %20 = tpu.matmul %6, %18, %cst_14 {dimension_numbers = #tpu.dot_dimension_numbers<[1], [0], [0], [1], [0, 0, 1, 1], [], []>} : vector<4x32xf32>, vector<32x256xf32>, vector<4x256xf32> -> vector<4x256xf32>
    %21 = arith.addf %19, %20 : vector<4x256xf32>
    %c0_15 = arith.constant 0 : index
    %c0_16 = arith.constant 0 : index
    %22 = vector.load %arg9[%c0_15, %c0_16] : memref<4x256xf32, #tpu.memory_space<vmem>>, vector<4x256xf32>
    tpu.vector_store %arg9[%c0_15, %c0_16], %21 {strides = array<i32>} : memref<4x256xf32, #tpu.memory_space<vmem>>, vector<4x256xf32>,
    %c0_i32_17 = arith.constant 0 : i32
    %23 = arith.cmpi eq, %arg2, %c0_i32_17 : i32
    %24 = arith.extui %23 : i1 to i32
    %c0_i32_18 = arith.constant 0 : i32
    %25 = arith.cmpi ne, %24, %c0_i32_18 : i32
    scf.if %25 {
      %c0_19 = arith.constant 0 : index
      %c0_20 = arith.constant 0 : index
      %26 = vector.load %arg9[%c0_19, %c0_20] : memref<4x256xf32, #tpu.memory_space<vmem>>, vector<4x256xf32>
      %c0_21 = arith.constant 0 : index
      %c0_22 = arith.constant 0 : index
      %27 = vector.load %arg7[%c0_21, %c0_22] : memref<4x1xf32, #tpu.memory_space<vmem>>, vector<4x1xf32>
      %28 = vector.broadcast %27 : vector<4x1xf32> to vector<4x256xf32>
      %29 = arith.addf %26, %28 : vector<4x256xf32>
      %c0_23 = arith.constant 0 : index
      %c0_24 = arith.constant 0 : index
      %c0_25 = arith.constant 0 : index
      %30 = vector.load %arg8[%c0_23, %c0_24, %c0_25] : memref<1x4x256xf32, #tpu.memory_space<vmem>>, vector<1x4x256xf32>
      %31 = vector.shape_cast %30 : vector<1x4x256xf32> to vector<4x256xf32>
      %32 = vector.shape_cast %29 : vector<4x256xf32> to vector<1x4x256xf32>
      tpu.vector_store %arg8[%c0_23, %c0_24, %c0_25], %32 {strides = array<i32>} : memref<1x4x256xf32, #tpu.memory_space<vmem>>, vector<1x4x256xf32>,
    } else {
    }
    return
  }
  func.func @transform_0(%arg0: i32, %arg1: i32, %arg2: i32) -> (i32, i32, i32) {
    %c0_i32 = arith.constant 0 : i32
    %c0_i32_0 = arith.constant 0 : i32
    return %arg0, %c0_i32, %arg1 : i32, i32, i32
  }
  func.func @transform_1(%arg0: i32, %arg1: i32, %arg2: i32) -> (i32, i32) {
    %c0_i32 = arith.constant 0 : i32
    %c0_i32_0 = arith.constant 0 : i32
    return %arg2, %c0_i32 : i32, i32
  }
  func.func @transform_2(%arg0: i32, %arg1: i32, %arg2: i32) -> (i32, i32) {
    %c0_i32 = arith.constant 0 : i32
    %c0_i32_0 = arith.constant 0 : i32
    return %arg2, %c0_i32 : i32, i32
  }
  func.func @transform_3(%arg0: i32, %arg1: i32, %arg2: i32) -> (i32, i32) {
    %c0_i32 = arith.constant 0 : i32
    %c0_i32_0 = arith.constant 0 : i32
    return %c0_i32, %arg2 : i32, i32
  }
  func.func @transform_4(%arg0: i32, %arg1: i32, %arg2: i32) -> (i32, i32) {
    %c0_i32 = arith.constant 0 : i32
    %c0_i32_0 = arith.constant 0 : i32
    %c0_i32_1 = arith.constant 0 : i32
    return %c0_i32, %c0_i32_0 : i32, i32
  }
  func.func @transform_5(%arg0: i32, %arg1: i32, %arg2: i32) -> (i32, i32, i32) {
    %c0_i32 = arith.constant 0 : i32
    %c0_i32_0 = arith.constant 0 : i32
    return %arg0, %c0_i32, %arg1 : i32, i32, i32
  }
}

</mosaic_0001>

<bundles_post_ra>
// kernel: tpu_custom_call.1
= control target key start
LH: loop header
LB: loop body
LE: loop exit
PB: predicated region body
PF: predicated region fallthrough
CT: control target
= control target key end

     0   :  { %10 = vsyncpa [#allocation4], 0  ;;  %s1114_s0 = inlined_call_operand.vmem [shape: f32[2,4,256], index: 0, kind: input, shape index: {}]   ;;  %s1115_s1 = inlined_call_operand.vmem [shape: f32[32,4], index: 1, kind: input, shape index: {}]   ;;  %s1116_s2 = inlined_call_operand.vmem [shape: f32[32,1], index: 2, kind: input, shape index: {}]   ;;  %s1117_s3 = inlined_call_operand.vmem [shape: f32[4,32], index: 3, kind: input, shape index: {}]   ;;  %s1118_s4 = inlined_call_operand.vmem [shape: f32[4,1], index: 4, kind: input, shape index: {}]   ;;  %s1119_s5 = inlined_call_operand.hbm [shape: f32[2,4,256], index: 5, kind: output, shape index: {}]  }
   0x1   :  { %12 = vsyncpa [#allocation4 + $0x1], 0  ;;  %s972_s18 = smov 0   ;;  %s974_s19 = smov 0  }
   0x2   :  { %s976_s20 = smov 0   ;;  %s978_s21 = smov 0  }
   0x3   :  { %s980_s22 = smov 0   ;;  %s982_s23 = smov 0  }
   0x4 LB: > { %s748_s24 = sadd.s32 4294967295, %s936_s23   ;;  %s749_s25 = sadd.s32 4294967294, %s936_s23   ;;  %s936_s23 = sphi %s982_s23, %s18_s23   ;;  %s932_s22 = sphi %s980_s22, %s1126_s22   ;;  %s928_s21 = sphi %s978_s21, %s1125_s21   ;;  %s924_s20 = sphi %s976_s20, %s1124_s20   ;;  %s920_s19 = sphi %s974_s19, %s1123_s19   ;;  %s916_s18 = sphi %s972_s18, %s1122_s18  }
   0x5   : > { %s37_s26 = sadd.s32 1, %s932_s22  ;;  %s173_s27 = sadd.s32 1, %s924_s20 }
   0x6   : > { %p39_p0 = scmp.ge.s32.totalorder %s37_s26, 2  ;;  %p183_p1 = scmp.ne.s32.totalorder %s924_s20, %s920_s19 }
   0x7   : > { %p184_p2 = scmp.eq.s32.totalorder %s748_s24, 1  ;;  %p189_p3 = scmp.ne.s32.totalorder %s920_s19, %s916_s18 }
   0x8   : > { %s1128_s26 = smov (%p39_p0, %s37_s26), 0  ;;  %p190_p5 = scmp.eq.s32.totalorder %s749_s25, 1 }
   0x9   : > { %p1012_p4 = por %p184_p2, %p183_p1  ;;  %s168_s29 = ssub.s32 %s932_s22, %s1128_s26 }
   0xa   : > { %p755_p6 = scmp.ge.s32.totalorder %s936_s23, 1  ;;  %p171_p7 = scmp.eq.s32.totalorder %s168_s29, 0 }
   0xb   : > { %p1019_p8 = por %p190_p5, %p189_p3  ;;  %p249_p9 = scmp.lt.s32.totalorder %s936_s23, 3 }
   0xc   : > { %s1025_s6 = scalar_select %p171_p7, %s924_s20, %s173_s27  }
   0xd   : > { %p250_p10 = pnand %p755_p6, %p249_p9 }
   0xe   : > { %p296_p11 = scmp.lt.s32.totalorder (!%p250_p10), %s928_s21, 1  ;;  %v938_v0 = vmov (!%p250_p10), 0.0   ;;  %v333_v1 = vld [vmem:[%s1116_s2] sm:$0xff] (!%p250_p10)  ;;  %v939_v2 = vmov (!%p250_p10), 0   ;;  %v335_v3 = vld [vmem:[%s1116_s2 + $0x10] sm:$0xff] (!%p250_p10)  ;;  %v334_v4 = vld [vmem:[%s1116_s2 + $0x8] sm:$0xff] (!%p250_p10) }
   0xf   : > { %253 = sbr.rel (%p250_p10) target bundleno = 512 (0x200), region = 40  ;;  %441 = vmatprep.mubr.f32.mxu0 (!%p250_p10), %v938_v0  ;;  %575 = vmatprep.mubr.f32.mxu1 (!%p250_p10), %v938_v0  ;;  %v336_v5 = vld [vmem:[%s1116_s2 + $0x18] sm:$0xff] (!%p250_p10)  ;;  %vm372_vm0 = vcmask (!%p250_p10), 1043456   ;;  %v328_v8 = vld [vmem:[%s1115_s1] sm:$0xff] (!%p250_p10)  ;;  %vm359_vm1 = vcmask (!%p250_p10), 31744   ;;  %v329_v10 = vld [vmem:[%s1115_s1 + $0x8] sm:$0xff] (!%p250_p10) }
  0x10   : > { %839 = vset.pattern.permute.xlu0 (!%p250_p10), %v939_v2  ;;  %840 = vset.pattern.permute.xlu1 (!%p250_p10), %v939_v2  ;;  %v592_v9 = vld [vmem:[%s1118_s4] sm:$0xf] (!%p250_p10)  ;;  %v330_v11 = vld [vmem:[%s1115_s1 + $0x10] sm:$0xff] (!%p250_p10)  ;;  %v331_v12 = vld [vmem:[%s1115_s1 + $0x18] sm:$0xff] (!%p250_p10)  ;;  %vm507_vm2 = vcmask (!%p250_p10), 261120   ;;  %s292_s17 = sand.u32 (!%p250_p10), 1, %s920_s19  }
  0x11   : > { %339 = vperm.xlu0 (!%p250_p10), %839, %v333_v1   ;;  %349 = vperm.xlu1 (!%p250_p10), %840, %v335_v3   ;;  %s756_s24 = sshll.u32 (!%p250_p10), %s292_s17, 3  ;;  %s608_s10 = scalar_lea.sflag (!%p250_p10), [#allocation4], %s292_s17 }
  0x12   : > { %s294_s27 = scalar_lea.vmem (!%p250_p10), [#allocation3], %s756_s24 }
  0x13   : > { %s624_s29 = sshll.u32 (!%p250_p10), %s294_s27, 4  ;;  %s1069_s29 = int_to_ptr.vmem [resolvable:$true] %s624_s29 }
  0x14   : > { %s858_s11 = scalar_lea.vmem (!%p250_p10), %s1069_s29, 128 }
  0x15   : > { %344 = vperm.xlu0 (!%p250_p10), %839, %v334_v4   ;;  %354 = vperm.xlu1 (!%p250_p10), %840, %v336_v5   ;;  %p859_p12 = scmp.ne.s32.totalorder (!%p250_p10), %s1069_s29, %s858_s11 }
  0x16   : > { %s297_s9 = scalar_select %p296_p11, %s928_s21, 1 }
  0x17   : > { %p860_p13 = pnand %p859_p12, %p1012_p4 }
  0x18   : > { %s771_s12 = sshll.u32 %s297_s9, 3 }
  0x19   : > { %s303_s25 = scalar_lea.vmem %s1114_s0, %s771_s12  ;;  %595 = vperm.xlu0 %839, %v592_v9   ;;  %p861_p0 = pneg %p860_p13 }
  0x1a   : > { %v327_v6 = vld [vmem:[%s303_s25] sm:$0xff]  ;;  %s772_s25 = sshll.u32 %s928_s21, 7  ;;  %s941_s21 = smov [#allocation3]  }
  0x1b   : > { %v358_v7 = vcombine.high %v327_v6, %v327_v6  ;;  %s1067_s9 = scalar_lea.hbm %s1119_s5, %s772_s25  ;;  %s862_s12 = sshll.u32 %s941_s21, 4  ;;  %s863_s12 = int_to_ptr.vmem [resolvable:$false] %s862_s12 }
  0x1c   : > { %s864_s13 = scalar_lea.vmem %s863_s12, 256  ;;  %p865_p1 = scmp.lt.s32.totalorder %s1069_s29, %s863_s12 }
  0x1d   : > { %759 = vmatprep.subr.msk.mxu0 %vm372_vm0, %v358_v7  ;;  %p866_p2 = scmp.lt.s32.totalorder %s864_s13, %s858_s11 }
  0x1e   : > { %760 = vmatpush1.msk.msra.mxu0 %vm372_vm0, %v327_v6 }
  0x1f   : > { %761 = vmatmul.mubr.msk.f32.vlgmr.msra.gmra.mrb[0].mxu0 %vm359_vm1, %v328_v8  ;;  %p867_p3 = por %p866_p2, %p865_p1 }
  0x20   : > { %447 = vmatprep.mubr.f32.mxu0 %v938_v0 }
  0x21   : > { %p868_p5 = pnand %p867_p3, %p861_p0 }
  0x23   : > { %762 = vmatmul.mubr.msk.f32.gmra.mrb[2].mxu0 %vm359_vm1, %v329_v10 }
  0x24   : > { %453 = vmatprep.mubr.f32.mxu0 %v938_v0 }
  0x27   : > { %763 = vmatmul.mubr.msk.f32.gmra.mrb[4].mxu0 %vm359_vm1, %v330_v11 }
  0x28   : > { %459 = vmatprep.mubr.f32.mxu0 %v938_v0 }
  0x2b   : > { %764 = vmatmul.mubr.msk.f32.gmra.mrb[6].mxu0 %vm359_vm1, %v331_v12 }
  0x90   : > { %v340_v13 = vpop.permute.xlu0 %339  ;;  %v350_v24 = vpop.permute.xlu1 %349 }
  0x94   : > { %v345_v19 = vpop.permute.xlu0 %344  ;;  %v355_v33 = vpop.permute.xlu1 %354 }
  0xf2   : > { %v443_v14 = vpop.f32.mrb[0].mxu0 }
  0xf3   : > { %v444_v15 = vadd.f32 %v443_v14, %v340_v13  ;;  %v445_v16 = vpop.f32.mrb[1].mxu0  ;;  %v940_v14 = vmov 839922192  }
  0xf4   : > { %v446_v17 = vadd.f32 %v445_v16, %v340_v13  ;;  %v332_v13 = vld [vmem:[%s1117_s3] sm:$0xf]  ;;  %v600_v16 = vlaneseq }
  0xf5   : > { %v474_v18 = vmul.f32 0.70710677, %v444_v15  ;;  %v466_v47 = vmul.f32 0.5, %v444_v15  ;;  %v598_v15 = vunpack.c.l.s4 %v940_v14 }
  0xf6   : > { %v475_v20 = vmul.f32 0.70710677, %v446_v17  ;;  %v449_v21 = vpop.f32.mrb[2].mxu0  ;;  %v467_v50 = vmul.f32 0.5, %v446_v17 }
  0xf7   : > { %842 = verf.f32 %v474_v18  ;;  %v450_v22 = vadd.f32 %v449_v21, %v345_v19  ;;  %v451_v23 = vpop.f32.mrb[3].mxu0  ;;  %v599_v17 = vunpack.c.0.s8 %v598_v15  ;;  %v601_v18 = vshrl.u32 %v600_v16, 7 }
  0xf8   : > { %844 = verf.f32 %v475_v20  ;;  %v452_v25 = vadd.f32 %v451_v23, %v345_v19  ;;  %v596_v20 = vpop.permute.xlu0 %595 }
  0xf9   : > { %v476_v26 = vmul.f32 0.70710677, %v450_v22  ;;  %v468_v48 = vmul.f32 0.5, %v450_v22  ;;  %v602_v19 = vsub.s32 %v599_v17, %v601_v18 }
  0xfa   : > { %v477_v27 = vmul.f32 0.70710677, %v452_v25  ;;  %v455_v28 = vpop.f32.mrb[4].mxu0  ;;  %v469_v51 = vmul.f32 0.5, %v452_v25 }
  0xfb   : > { %846 = verf.f32 %v476_v26  ;;  %v456_v29 = vadd.f32 %v455_v28, %v350_v24  ;;  %v457_v30 = vpop.f32.mrb[5].mxu0  ;;  %v603_v23 = vrot.slane %v596_v20, %v602_v19 }
  0xfc   : > { %848 = verf.f32 %v477_v27  ;;  %v458_v31 = vadd.f32 %v457_v30, %v350_v24 }
  0xfd   : > { %v478_v32 = vmul.f32 0.70710677, %v456_v29  ;;  %v470_v1 = vmul.f32 0.5, %v456_v29 }
  0xfe   : > { %v479_v34 = vmul.f32 0.70710677, %v458_v31  ;;  %v461_v35 = vpop.f32.mrb[6].mxu0  ;;  %v471_v4 = vmul.f32 0.5, %v458_v31 }
  0xff   : > { %850 = verf.f32 %v478_v32  ;;  %v462_v36 = vadd.f32 %v461_v35, %v355_v33  ;;  %v463_v37 = vpop.f32.mrb[7].mxu0 }
 0x100   : > { %852 = verf.f32 %v479_v34  ;;  %v464_v38 = vadd.f32 %v463_v37, %v355_v33 }
 0x101   : > { %v843_v39 = vpop.eup %842  ;;  %v480_v40 = vmul.f32 0.70710677, %v462_v36  ;;  %v472_v2 = vmul.f32 0.5, %v462_v36 }
 0x102   : > { %v845_v41 = vpop.eup %844  ;;  %v481_v42 = vmul.f32 0.70710677, %v464_v38  ;;  %v490_v43 = vadd.f32 1.0, %v843_v39  ;;  %v473_v5 = vmul.f32 0.5, %v464_v38 }
 0x103   : > { %854 = verf.f32 %v480_v40  ;;  %v491_v45 = vadd.f32 1.0, %v845_v41 }
 0x104   : > { %856 = verf.f32 %v481_v42  ;;  %v498_v53 = vmul.f32 %v490_v43, %v466_v47 }
 0x105   : > { %v847_v44 = vpop.eup %846  ;;  %v499_v56 = vmul.f32 %v491_v45, %v467_v50 }
 0x106   : > { %v849_v46 = vpop.eup %848  ;;  %v492_v49 = vadd.f32 1.0, %v847_v44 }
 0x107   : > { %v493_v52 = vadd.f32 1.0, %v849_v46 }
 0x108   : > { %v500_v54 = vmul.f32 %v492_v49, %v468_v48 }
 0x109   : > { %v851_v55 = vpop.eup %850  ;;  %v501_v57 = vmul.f32 %v493_v52, %v469_v51 }
 0x10a   : > { %v853_v58 = vpop.eup %852  ;;  %v775_v59 = vpack.c.bf16 %v500_v54, %v498_v53  ;;  %v494_v61 = vadd.f32 1.0, %v851_v55 }
 0x10b   : > { %v773_v60 = vpack.c.bf16 %v501_v57, %v499_v56  ;;  %v495_v63 = vadd.f32 1.0, %v853_v58 }
 0x10c   : > { %v502_v7 = vmul.f32 %v494_v61, %v470_v1 }
 0x10d   : > { %v855_v62 = vpop.eup %854  ;;  %774 = vmatprep.subr.bf16.mxu1 %v773_v60  ;;  %v503_v9 = vmul.f32 %v495_v63, %v471_v4 }
 0x10e   : > { %v857_v0 = vpop.eup %856  ;;  %v496_v3 = vadd.f32 1.0, %v855_v62  ;;  %776 = vmatpush1.bf16.msra.mxu1 %v775_v59 }
 0x10f   : > { %v497_v6 = vadd.f32 1.0, %v857_v0 }
 0x110   : > { %v504_v8 = vmul.f32 %v496_v3, %v472_v2 }
 0x111   : > { %v505_v10 = vmul.f32 %v497_v6, %v473_v5 }
 0x112   : > { %v779_v11 = vpack.c.bf16 %v504_v8, %v502_v7 }
 0x113   : > { %v777_v12 = vpack.c.bf16 %v505_v10, %v503_v9 }
 0x115   : > { %778 = vmatprep.subr.bf16.mxu1 %v777_v12 }
 0x116   : > { %780 = vmatpush1.bf16.msra.mxu1 %v779_v11 }
 0x119   : > { %765 = vmatmul.mubr.msk.f32.vlgmr.msra.gmra.mrb[0].mxu1 %vm507_vm2, %v332_v13 }
 0x1ec   : > { %v577_v21 = vpop.f32.mrb[0].mxu1 }
 0x1ed   : > { %v579_v22 = vpop.f32.mrb[1].mxu1 }
 0x1ee   : > { %v584_v24 = vcombine.low %v577_v21, %v579_v22 }
 0x1f0   : > { %v605_v25 = vadd.f32 %v603_v23, %v584_v24 }
 0x1f2   : > { %606 = vst [vmem:[%s294_s27] sm:$0xff] %v605_v25 }
 0x1f3   : > { %871 = shalt.err (!%p868_p5)
}
 0x1f4   : > { %s872_s14 = scalar_lea.hbm %s1067_s9, 128  ;;  %s876_s17 = scalar_lea.hbm %s1119_s5, 256 }
 0x1f5   : > { %p873_p6 = scmp.ne.s32.totalorder %s1067_s9, %s872_s14  ;;  %p877_p10 = scmp.lt.u32.totalorder %s1067_s9, %s1119_s5 }
 0x1f6   : > { %p878_p11 = scmp.lt.u32.totalorder %s876_s17, %s872_s14  ;;  %p880_p13 = scmp.lt.u32.totalorder %s872_s14, %s1067_s9 }
 0x1f7   : > { %p874_p7 = pnand %p873_p6, %p1012_p4 }
 0x1f8   : > { %p879_p12 = por %p878_p11, %p877_p10 }
 0x1f9   : > { %p875_p9 = pneg %p874_p7 }
 0x1fa   : > { %p881_p0 = por %p880_p13, %p879_p12 }
 0x1fc   : > { %p882_p1 = pnand %p881_p0, %p875_p9 }
 0x1fe   : > { %885 = shalt.err (!%p882_p1)
}
 0x1ff   : > { %781 = dma.vmem_to_hbm [thread:$0]  (%p1012_p4), %s1069_s29, 128, %s1067_s9, %s608_s10  }
 0x200 PF: > { %p787_p2 = scmp.ge.s32.totalorder %s936_s23, 2  ;;  %s636_s27 = sand.u32 1, %s916_s18  }
 0x201   : > { %s637_s7 = scalar_lea.sflag [#allocation4], %s636_s27 }
 0x202   : > { %p784_p3 = pnand %p787_p2, %p1019_p8 }
 0x204   : > { %911 = dma.done.wait (!%p784_p3), %s637_s7, 128  }
 0x205   : > { %913 = vsyncadd (!%p784_p3), %s637_s7, 4294967168  ;;  %s18_s23 = sadd.s32 1, %s936_s23   ;;  %s1122_s18 = smov %s920_s19 }
 0x206   : > { %p15_p5 = scmp.ge.s32.totalorder %s18_s23, 4   ;;  %s1123_s19 = smov %s924_s20 }
 0x207   : > { %s1124_s20 = smov %s1025_s6  ;;  %s1125_s21 = smov %s932_s22 }
 0x208   : > { %s1126_s22 = smov %s1128_s26  ;;  %17 = sbr.rel (!%p15_p5) target bundleno = 4 (0x4), region = 92 }
 0x20f   :  { %642 = vsyncpa [#allocation4], 1 }
 0x210   :  { %644 = vsyncpa [#allocation4 + $0x1], 1 }

// kernel: tpu_custom_call.1
= control target key start
LH: loop header
LB: loop body
LE: loop exit
PB: predicated region body
PF: predicated region fallthrough
CT: control target
= control target key end

     0   :  { %10 = vsyncpa [#allocation4], 0  ;;  %s1114_s0 = inlined_call_operand.vmem [shape: f32[2,4,256], index: 0, kind: input, shape index: {}]   ;;  %s1115_s1 = inlined_call_operand.vmem [shape: f32[32,4], index: 1, kind: input, shape index: {}]   ;;  %s1116_s2 = inlined_call_operand.vmem [shape: f32[32,1], index: 2, kind: input, shape index: {}]   ;;  %s1117_s3 = inlined_call_operand.vmem [shape: f32[4,32], index: 3, kind: input, shape index: {}]   ;;  %s1118_s4 = inlined_call_operand.vmem [shape: f32[4,1], index: 4, kind: input, shape index: {}]   ;;  %s1119_s5 = inlined_call_operand.hbm [shape: f32[2,4,256], index: 5, kind: output, shape index: {}]  }
   0x1   :  { %12 = vsyncpa [#allocation4 + $0x1], 0  ;;  %s972_s18 = smov 0   ;;  %s974_s19 = smov 0  }
   0x2   :  { %s976_s20 = smov 0   ;;  %s978_s21 = smov 0  }
   0x3   :  { %s980_s22 = smov 0   ;;  %s982_s23 = smov 0  }
   0x4 LB: > { %s748_s24 = sadd.s32 4294967295, %s936_s23   ;;  %s749_s25 = sadd.s32 4294967294, %s936_s23   ;;  %s936_s23 = sphi %s982_s23, %s18_s23   ;;  %s932_s22 = sphi %s980_s22, %s1126_s22   ;;  %s928_s21 = sphi %s978_s21, %s1125_s21   ;;  %s924_s20 = sphi %s976_s20, %s1124_s20   ;;  %s920_s19 = sphi %s974_s19, %s1123_s19   ;;  %s916_s18 = sphi %s972_s18, %s1122_s18  }
   0x5   : > { %s37_s26 = sadd.s32 1, %s932_s22  ;;  %s173_s27 = sadd.s32 1, %s924_s20 }
   0x6   : > { %p39_p0 = scmp.ge.s32.totalorder %s37_s26, 2  ;;  %p183_p1 = scmp.ne.s32.totalorder %s924_s20, %s920_s19 }
   0x7   : > { %p184_p2 = scmp.eq.s32.totalorder %s748_s24, 1  ;;  %p189_p3 = scmp.ne.s32.totalorder %s920_s19, %s916_s18 }
   0x8   : > { %s1128_s26 = smov (%p39_p0, %s37_s26), 0  ;;  %p190_p5 = scmp.eq.s32.totalorder %s749_s25, 1 }
   0x9   : > { %p1012_p4 = por %p184_p2, %p183_p1  ;;  %s168_s29 = ssub.s32 %s932_s22, %s1128_s26 }
   0xa   : > { %p755_p6 = scmp.ge.s32.totalorder %s936_s23, 1  ;;  %p171_p7 = scmp.eq.s32.totalorder %s168_s29, 0 }
   0xb   : > { %p1019_p8 = por %p190_p5, %p189_p3  ;;  %p249_p9 = scmp.lt.s32.totalorder %s936_s23, 3 }
   0xc   : > { %s1025_s6 = scalar_select %p171_p7, %s924_s20, %s173_s27  }
   0xd   : > { %p250_p10 = pnand %p755_p6, %p249_p9 }
   0xe   : > { %p296_p11 = scmp.lt.s32.totalorder (!%p250_p10), %s928_s21, 1  ;;  %v938_v0 = vmov (!%p250_p10), 0.0   ;;  %v333_v1 = vld [vmem:[%s1116_s2] sm:$0xff] (!%p250_p10)  ;;  %v939_v2 = vmov (!%p250_p10), 0   ;;  %v335_v3 = vld [vmem:[%s1116_s2 + $0x10] sm:$0xff] (!%p250_p10)  ;;  %v334_v4 = vld [vmem:[%s1116_s2 + $0x8] sm:$0xff] (!%p250_p10) }
   0xf   : > { %253 = sbr.rel (%p250_p10) target bundleno = 512 (0x200), region = 40  ;;  %441 = vmatprep.mubr.f32.mxu0 (!%p250_p10), %v938_v0  ;;  %575 = vmatprep.mubr.f32.mxu1 (!%p250_p10), %v938_v0  ;;  %v336_v5 = vld [vmem:[%s1116_s2 + $0x18] sm:$0xff] (!%p250_p10)  ;;  %vm372_vm0 = vcmask (!%p250_p10), 1043456   ;;  %v328_v8 = vld [vmem:[%s1115_s1] sm:$0xff] (!%p250_p10)  ;;  %vm359_vm1 = vcmask (!%p250_p10), 31744   ;;  %v329_v10 = vld [vmem:[%s1115_s1 + $0x8] sm:$0xff] (!%p250_p10) }
  0x10   : > { %839 = vset.pattern.permute.xlu0 (!%p250_p10), %v939_v2  ;;  %840 = vset.pattern.permute.xlu1 (!%p250_p10), %v939_v2  ;;  %v592_v9 = vld [vmem:[%s1118_s4] sm:$0xf] (!%p250_p10)  ;;  %v330_v11 = vld [vmem:[%s1115_s1 + $0x10] sm:$0xff] (!%p250_p10)  ;;  %v331_v12 = vld [vmem:[%s1115_s1 + $0x18] sm:$0xff] (!%p250_p10)  ;;  %vm507_vm2 = vcmask (!%p250_p10), 261120   ;;  %s292_s17 = sand.u32 (!%p250_p10), 1, %s920_s19  }
  0x11   : > { %339 = vperm.xlu0 (!%p250_p10), %839, %v333_v1   ;;  %349 = vperm.xlu1 (!%p250_p10), %840, %v335_v3   ;;  %s756_s24 = sshll.u32 (!%p250_p10), %s292_s17, 3  ;;  %s608_s10 = scalar_lea.sflag (!%p250_p10), [#allocation4], %s292_s17 }
  0x12   : > { %s294_s27 = scalar_lea.vmem (!%p250_p10), [#allocation3], %s756_s24 }
  0x13   : > { %s624_s29 = sshll.u32 (!%p250_p10), %s294_s27, 4  ;;  %s1069_s29 = int_to_ptr.vmem [resolvable:$true] %s624_s29 }
  0x14   : > { %s858_s11 = scalar_lea.vmem (!%p250_p10), %s1069_s29, 128 }
  0x15   : > { %344 = vperm.xlu0 (!%p250_p10), %839, %v334_v4   ;;  %354 = vperm.xlu1 (!%p250_p10), %840, %v336_v5   ;;  %p859_p12 = scmp.ne.s32.totalorder (!%p250_p10), %s1069_s29, %s858_s11 }
  0x16   : > { %s297_s9 = scalar_select %p296_p11, %s928_s21, 1 }
  0x17   : > { %p860_p13 = pnand %p859_p12, %p1012_p4 }
  0x18   : > { %s771_s12 = sshll.u32 %s297_s9, 3 }
  0x19   : > { %s303_s25 = scalar_lea.vmem %s1114_s0, %s771_s12  ;;  %595 = vperm.xlu0 %839, %v592_v9   ;;  %p861_p0 = pneg %p860_p13 }
  0x1a   : > { %v327_v6 = vld [vmem:[%s303_s25] sm:$0xff]  ;;  %s772_s25 = sshll.u32 %s928_s21, 7  ;;  %s941_s21 = smov [#allocation3]  }
  0x1b   : > { %v358_v7 = vcombine.high %v327_v6, %v327_v6  ;;  %s1067_s9 = scalar_lea.hbm %s1119_s5, %s772_s25  ;;  %s862_s12 = sshll.u32 %s941_s21, 4  ;;  %s863_s12 = int_to_ptr.vmem [resolvable:$false] %s862_s12 }
  0x1c   : > { %s864_s13 = scalar_lea.vmem %s863_s12, 256  ;;  %p865_p1 = scmp.lt.s32.totalorder %s1069_s29, %s863_s12 }
  0x1d   : > { %759 = vmatprep.subr.msk.mxu0 %vm372_vm0, %v358_v7  ;;  %p866_p2 = scmp.lt.s32.totalorder %s864_s13, %s858_s11 }
  0x1e   : > { %760 = vmatpush1.msk.msra.mxu0 %vm372_vm0, %v327_v6 }
  0x1f   : > { %761 = vmatmul.mubr.msk.f32.vlgmr.msra.gmra.mrb[0].mxu0 %vm359_vm1, %v328_v8  ;;  %p867_p3 = por %p866_p2, %p865_p1 }
  0x20   : > { %447 = vmatprep.mubr.f32.mxu0 %v938_v0 }
  0x21   : > { %p868_p5 = pnand %p867_p3, %p861_p0 }
  0x23   : > { %762 = vmatmul.mubr.msk.f32.gmra.mrb[2].mxu0 %vm359_vm1, %v329_v10 }
  0x24   : > { %453 = vmatprep.mubr.f32.mxu0 %v938_v0 }
  0x27   : > { %763 = vmatmul.mubr.msk.f32.gmra.mrb[4].mxu0 %vm359_vm1, %v330_v11 }
  0x28   : > { %459 = vmatprep.mubr.f32.mxu0 %v938_v0 }
  0x2b   : > { %764 = vmatmul.mubr.msk.f32.gmra.mrb[6].mxu0 %vm359_vm1, %v331_v12 }
  0x90   : > { %v340_v13 = vpop.permute.xlu0 %339  ;;  %v350_v24 = vpop.permute.xlu1 %349 }
  0x94   : > { %v345_v19 = vpop.permute.xlu0 %344  ;;  %v355_v33 = vpop.permute.xlu1 %354 }
  0xf2   : > { %v443_v14 = vpop.f32.mrb[0].mxu0 }
  0xf3   : > { %v444_v15 = vadd.f32 %v443_v14, %v340_v13  ;;  %v445_v16 = vpop.f32.mrb[1].mxu0  ;;  %v940_v14 = vmov 839922192  }
  0xf4   : > { %v446_v17 = vadd.f32 %v445_v16, %v340_v13  ;;  %v332_v13 = vld [vmem:[%s1117_s3] sm:$0xf]  ;;  %v600_v16 = vlaneseq }
  0xf5   : > { %v474_v18 = vmul.f32 0.70710677, %v444_v15  ;;  %v466_v47 = vmul.f32 0.5, %v444_v15  ;;  %v598_v15 = vunpack.c.l.s4 %v940_v14 }
  0xf6   : > { %v475_v20 = vmul.f32 0.70710677, %v446_v17  ;;  %v449_v21 = vpop.f32.mrb[2].mxu0  ;;  %v467_v50 = vmul.f32 0.5, %v446_v17 }
  0xf7   : > { %842 = verf.f32 %v474_v18  ;;  %v450_v22 = vadd.f32 %v449_v21, %v345_v19  ;;  %v451_v23 = vpop.f32.mrb[3].mxu0  ;;  %v599_v17 = vunpack.c.0.s8 %v598_v15  ;;  %v601_v18 = vshrl.u32 %v600_v16, 7 }
  0xf8   : > { %844 = verf.f32 %v475_v20  ;;  %v452_v25 = vadd.f32 %v451_v23, %v345_v19  ;;  %v596_v20 = vpop.permute.xlu0 %595 }
  0xf9   : > { %v476_v26 = vmul.f32 0.70710677, %v450_v22  ;;  %v468_v48 = vmul.f32 0.5, %v450_v22  ;;  %v602_v19 = vsub.s32 %v599_v17, %v601_v18 }
  0xfa   : > { %v477_v27 = vmul.f32 0.70710677, %v452_v25  ;;  %v455_v28 = vpop.f32.mrb[4].mxu0  ;;  %v469_v51 = vmul.f32 0.5, %v452_v25 }
  0xfb   : > { %846 = verf.f32 %v476_v26  ;;  %v456_v29 = vadd.f32 %v455_v28, %v350_v24  ;;  %v457_v30 = vpop.f32.mrb[5].mxu0  ;;  %v603_v23 = vrot.slane %v596_v20, %v602_v19 }
  0xfc   : > { %848 = verf.f32 %v477_v27  ;;  %v458_v31 = vadd.f32 %v457_v30, %v350_v24 }
  0xfd   : > { %v478_v32 = vmul.f32 0.70710677, %v456_v29  ;;  %v470_v1 = vmul.f32 0.5, %v456_v29 }
  0xfe   : > { %v479_v34 = vmul.f32 0.70710677, %v458_v31  ;;  %v461_v35 = vpop.f32.mrb[6].mxu0  ;;  %v471_v4 = vmul.f32 0.5, %v458_v31 }
  0xff   : > { %850 = verf.f32 %v478_v32  ;;  %v462_v36 = vadd.f32 %v461_v35, %v355_v33  ;;  %v463_v37 = vpop.f32.mrb[7].mxu0 }
 0x100   : > { %852 = verf.f32 %v479_v34  ;;  %v464_v38 = vadd.f32 %v463_v37, %v355_v33 }
 0x101   : > { %v843_v39 = vpop.eup %842  ;;  %v480_v40 = vmul.f32 0.70710677, %v462_v36  ;;  %v472_v2 = vmul.f32 0.5, %v462_v36 }
 0x102   : > { %v845_v41 = vpop.eup %844  ;;  %v481_v42 = vmul.f32 0.70710677, %v464_v38  ;;  %v490_v43 = vadd.f32 1.0, %v843_v39  ;;  %v473_v5 = vmul.f32 0.5, %v464_v38 }
 0x103   : > { %854 = verf.f32 %v480_v40  ;;  %v491_v45 = vadd.f32 1.0, %v845_v41 }
 0x104   : > { %856 = verf.f32 %v481_v42  ;;  %v498_v53 = vmul.f32 %v490_v43, %v466_v47 }
 0x105   : > { %v847_v44 = vpop.eup %846  ;;  %v499_v56 = vmul.f32 %v491_v45, %v467_v50 }
 0x106   : > { %v849_v46 = vpop.eup %848  ;;  %v492_v49 = vadd.f32 1.0, %v847_v44 }
 0x107   : > { %v493_v52 = vadd.f32 1.0, %v849_v46 }
 0x108   : > { %v500_v54 = vmul.f32 %v492_v49, %v468_v48 }
 0x109   : > { %v851_v55 = vpop.eup %850  ;;  %v501_v57 = vmul.f32 %v493_v52, %v469_v51 }
 0x10a   : > { %v853_v58 = vpop.eup %852  ;;  %v775_v59 = vpack.c.bf16 %v500_v54, %v498_v53  ;;  %v494_v61 = vadd.f32 1.0, %v851_v55 }
 0x10b   : > { %v773_v60 = vpack.c.bf16 %v501_v57, %v499_v56  ;;  %v495_v63 = vadd.f32 1.0, %v853_v58 }
 0x10c   : > { %v502_v7 = vmul.f32 %v494_v61, %v470_v1 }
 0x10d   : > { %v855_v62 = vpop.eup %854  ;;  %774 = vmatprep.subr.bf16.mxu1 %v773_v60  ;;  %v503_v9 = vmul.f32 %v495_v63, %v471_v4 }
 0x10e   : > { %v857_v0 = vpop.eup %856  ;;  %v496_v3 = vadd.f32 1.0, %v855_v62  ;;  %776 = vmatpush1.bf16.msra.mxu1 %v775_v59 }
 0x10f   : > { %v497_v6 = vadd.f32 1.0, %v857_v0 }
 0x110   : > { %v504_v8 = vmul.f32 %v496_v3, %v472_v2 }
 0x111   : > { %v505_v10 = vmul.f32 %v497_v6, %v473_v5 }
 0x112   : > { %v779_v11 = vpack.c.bf16 %v504_v8, %v502_v7 }
 0x113   : > { %v777_v12 = vpack.c.bf16 %v505_v10, %v503_v9 }
 0x115   : > { %778 = vmatprep.subr.bf16.mxu1 %v777_v12 }
 0x116   : > { %780 = vmatpush1.bf16.msra.mxu1 %v779_v11 }
 0x119   : > { %765 = vmatmul.mubr.msk.f32.vlgmr.msra.gmra.mrb[0].mxu1 %vm507_vm2, %v332_v13 }
 0x1ec   : > { %v577_v21 = vpop.f32.mrb[0].mxu1 }
 0x1ed   : > { %v579_v22 = vpop.f32.mrb[1].mxu1 }
 0x1ee   : > { %v584_v24 = vcombine.low %v577_v21, %v579_v22 }
 0x1f0   : > { %v605_v25 = vadd.f32 %v603_v23, %v584_v24 }
 0x1f2   : > { %606 = vst [vmem:[%s294_s27] sm:$0xff] %v605_v25 }
 0x1f3   : > { %871 = shalt.err (!%p868_p5)
}
 0x1f4   : > { %s872_s14 = scalar_lea.hbm %s1067_s9, 128  ;;  %s876_s17 = scalar_lea.hbm %s1119_s5, 256 }
 0x1f5   : > { %p873_p6 = scmp.ne.s32.totalorder %s1067_s9, %s872_s14  ;;  %p877_p10 = scmp.lt.u32.totalorder %s1067_s9, %s1119_s5 }
 0x1f6   : > { %p878_p11 = scmp.lt.u32.totalorder %s876_s17, %s872_s14  ;;  %p880_p13 = scmp.lt.u32.totalorder %s872_s14, %s1067_s9 }
 0x1f7   : > { %p874_p7 = pnand %p873_p6, %p1012_p4 }
 0x1f8   : > { %p879_p12 = por %p878_p11, %p877_p10 }
 0x1f9   : > { %p875_p9 = pneg %p874_p7 }
 0x1fa   : > { %p881_p0 = por %p880_p13, %p879_p12 }
 0x1fc   : > { %p882_p1 = pnand %p881_p0, %p875_p9 }
 0x1fe   : > { %885 = shalt.err (!%p882_p1)
}
 0x1ff   : > { %781 = dma.vmem_to_hbm [thread:$0]  (%p1012_p4), %s1069_s29, 128, %s1067_s9, %s608_s10  }
 0x200 PF: > { %p787_p2 = scmp.ge.s32.totalorder %s936_s23, 2  ;;  %s636_s27 = sand.u32 1, %s916_s18  }
 0x201   : > { %s637_s7 = scalar_lea.sflag [#allocation4], %s636_s27 }
 0x202   : > { %p784_p3 = pnand %p787_p2, %p1019_p8 }
 0x204   : > { %911 = dma.done.wait (!%p784_p3), %s637_s7, 128  }
 0x205   : > { %913 = vsyncadd (!%p784_p3), %s637_s7, 4294967168  ;;  %s18_s23 = sadd.s32 1, %s936_s23   ;;  %s1122_s18 = smov %s920_s19 }
 0x206   : > { %p15_p5 = scmp.ge.s32.totalorder %s18_s23, 4   ;;  %s1123_s19 = smov %s924_s20 }
 0x207   : > { %s1124_s20 = smov %s1025_s6  ;;  %s1125_s21 = smov %s932_s22 }
 0x208   : > { %s1126_s22 = smov %s1128_s26  ;;  %17 = sbr.rel (!%p15_p5) target bundleno = 4 (0x4), region = 92 }
 0x20f   :  { %642 = vsyncpa [#allocation4], 1 }
 0x210   :  { %644 = vsyncpa [#allocation4 + $0x1], 1 }

</bundles_post_ra>
